<compile_context>
chip_gen: v5e
topology: v5e:2x2
jax: 0.10.0
libtpu: 0.0.40
codegen_flags: <defaults>
</compile_context>

<pallas_src>
import functools

import jax
import jax.numpy as jnp
from jax import lax
from jax.experimental import pallas as pl
from jax.experimental.pallas import tpu as pltpu


def _mha_kernel(x_ref, w_ref, b_ref, o_ref, *, n_heads, att_dim):
    """One batch element per grid step.

    x_ref : (1, S, E)        activations (possibly bf16)
    w_ref : (3, H, E, A)     stacked [Wq, Wk, Wv] per-head weights
    b_ref : (3, H, 1, A)     stacked biases (f32)
    o_ref : (1, S, H*A)      concatenated per-head contexts (lane-dense block)
    """
    x = x_ref[0]                                  # (S, E)
    mm_dtype = x_ref.dtype                        # matmul operand dtype
    scale = 1.0 / (float(att_dim) ** 0.5)

    # Static loop over heads. Every iteration ends with a store into o_ref, so
    # only one head's q/k/v/scores are live at a time (no H-wide live ranges,
    # no final lane-concatenation).
    for h in range(n_heads):
        # Per-head (E, A) weight tiles via *leading-axis* indexing: contiguous,
        # no sub-128-lane slicing / relayout of a fused qkv slab.
        q = jnp.dot(x, w_ref[0, h], preferred_element_type=jnp.float32)
        q = (q + b_ref[0, h]) * scale             # scale Q: S*A elems, not S*S
        k = jnp.dot(x, w_ref[1, h], preferred_element_type=jnp.float32)
        k = k + b_ref[1, h]
        v = jnp.dot(x, w_ref[2, h], preferred_element_type=jnp.float32)
        v = v + b_ref[2, h]

        # scores = q @ k^T: contract the head dims, no materialized transpose.
        # (Contraction width = A; inherent to the head dim, 64/128 in prod.)
        s = lax.dot_general(q.astype(mm_dtype), k.astype(mm_dtype),
                            (((1,), (1,)), ((), ())),
                            preferred_element_type=jnp.float32)   # (S, S) f32

        # Softmax over the key axis, all in f32, exact divide (bit-faithful).
        m = jnp.max(s, axis=-1, keepdims=True)
        e = jnp.exp(s - m)
        wgt = e / jnp.sum(e, axis=-1, keepdims=True)

        ctx = jnp.dot(wgt.astype(mm_dtype), v.astype(mm_dtype),
                      preferred_element_type=jnp.float32)         # (S, A) f32

        # Immediate store into this head's STATIC lane slice of the resident
        # output block (VMEM); the HBM writeback is one lane-dense store per
        # batch element, matching torch.cat(..., dim=-1) ordering.
        lo = h * att_dim
        o_ref[0, :, lo:lo + att_dim] = ctx.astype(o_ref.dtype)


def prepare_mha_params(wq, bq, wk, bk, wv, bv, *, matmul_dtype=None):
    """Stack per-head Q/K/V params into kernel layout.  Call ONCE at init
    (hoisted out of the forward path per the perf review), not per forward.

    wq/wk/wv: (H, E, A)   bq/bk/bv: (H, 1, A)
    Returns w_qkv (3, H, E, A) and b_qkv (3, H, 1, A) (biases kept f32).
    """
    w_qkv = jnp.stack([wq, wk, wv], axis=0)
    b_qkv = jnp.stack([bq, bk, bv], axis=0).astype(jnp.float32)
    if matmul_dtype is not None:
        w_qkv = w_qkv.astype(matmul_dtype)       # e.g. bf16 operands, f32 acc
    return w_qkv, b_qkv


def multi_head_attention(x, w_qkv, b_qkv):
    """x: (B, S, E); w_qkv: (3, H, E, A); b_qkv: (3, H, 1, A) -> (B, S, H*A).

    The matmul operand dtype is taken from the pre-fused weights (see
    prepare_mha_params); activations are cast per call if needed.
    """
    B, S, E = x.shape
    _, H, _, A = w_qkv.shape
    HA = H * A
    out_dtype = x.dtype

    if x.dtype != w_qkv.dtype:
        x = x.astype(w_qkv.dtype)

    kernel = functools.partial(_mha_kernel, n_heads=H, att_dim=A)

    return pl.pallas_call(
        kernel,
        out_shape=jax.ShapeDtypeStruct((B, S, HA), out_dtype),
        grid=(B,),
        in_specs=[
            pl.BlockSpec((1, S, E), lambda b: (b, 0, 0)),
            pl.BlockSpec((3, H, E, A), lambda b: (0, 0, 0, 0)),
            pl.BlockSpec((3, H, 1, A), lambda b: (0, 0, 0, 0)),
        ],
        out_specs=pl.BlockSpec((1, S, HA), lambda b: (b, 0, 0)),
        # B=2 parallel grid elements -> both v7x TensorCores get work; on
        # v5e/v6e (1 TC) this is a no-op.
        # TODO(synk): for B==1 (decode), add a q-tile "parallel" axis so v7x
        # does not idle one core.
        compiler_params=pltpu.CompilerParams(
            dimension_semantics=("parallel",)),
    )(x, w_qkv, b_qkv)


def _reference(x, wq, bq, wk, bk, wv, bv):
    # pure-JAX reference matching the PyTorch forward
    q = jnp.einsum('bse,hea->bhsa', x, wq) + bq[None]
    k = jnp.einsum('bse,hea->bhsa', x, wk) + bk[None]
    v = jnp.einsum('bse,hea->bhsa', x, wv) + bv[None]
    A = q.shape[-1]
    s = jnp.einsum('bhqa,bhka->bhqk', q, k) / jnp.sqrt(jnp.float32(A))
    w = jax.nn.softmax(s, axis=-1)
    ctx = jnp.einsum('bhqk,bhka->bhqa', w, v)
    B, H, S, A = ctx.shape
    return ctx.transpose(0, 2, 1, 3).reshape(B, S, H * A)


if __name__ == "__main__":
    B, S, E, H = 2, 8, 32, 4
    A = E // H

    key = jax.random.PRNGKey(0)
    kx, kq, kbq, kk, kbk, kv, kbv = jax.random.split(key, 7)

    x = jax.random.normal(kx, (B, S, E), dtype=jnp.float32)
    # nn.Linear-like per-head params, stored transposed as (E, A) per head.
    wq = jax.random.normal(kq, (H, E, A), dtype=jnp.float32) * 0.1
    bq = jax.random.normal(kbq, (H, 1, A), dtype=jnp.float32) * 0.1
    wk = jax.random.normal(kk, (H, E, A), dtype=jnp.float32) * 0.1
    bk = jax.random.normal(kbk, (H, 1, A), dtype=jnp.float32) * 0.1
    wv = jax.random.normal(kv, (H, E, A), dtype=jnp.float32) * 0.1
    bv = jax.random.normal(kbv, (H, 1, A), dtype=jnp.float32) * 0.1

    ref = _reference(x, wq, bq, wk, bk, wv, bv)

    # --- f32 operands (exact softmax divide -> tight tolerance) ---
    w32, b32 = prepare_mha_params(wq, bq, wk, bk, wv, bv)          # init-time
    out = jax.block_until_ready(multi_head_attention(x, w32, b32))
    assert out.shape == (B, S, H * A), out.shape
    assert jnp.allclose(out, ref, atol=1e-4, rtol=1e-4), \
        "mismatch vs reference (f32)"

    # --- bf16 matmul operands with f32 accumulation (MXU-native) ---
    wbf, bbf = prepare_mha_params(wq, bq, wk, bk, wv, bv,
                                  matmul_dtype=jnp.bfloat16)       # init-time
    out_bf16 = jax.block_until_ready(multi_head_attention(x, wbf, bbf))
    assert out_bf16.shape == (B, S, H * A), out_bf16.shape
    assert jnp.allclose(out_bf16, ref, atol=5e-2, rtol=5e-2), \
        "mismatch vs reference (bf16)"

    print("KERNEL_OK")
</pallas_src>

<mosaic_0001>
module attributes {stable_mosaic.version = 11 : i64} {
  func.func @_mha_kernel(%arg0: i32, %arg1: memref<1x8x32xf32, #tpu.memory_space<vmem>>, %arg2: memref<3x4x32x8xf32, #tpu.memory_space<vmem>>, %arg3: memref<3x4x1x8xf32, #tpu.memory_space<vmem>>, %arg4: memref<1x8x32xf32, #tpu.memory_space<vmem>>) attributes {dimension_semantics = [#tpu.dimension_semantics<parallel>], iteration_bounds = array<i64: 2>, scalar_prefetch = 0 : i64, scratch_operands = 0 : i64, tpu.core_type = #tpu.core_type<tc>, window_params = [{transform_indices = @transform_0, window_bounds = array<i64: 1, 8, 32>}, {pipeline_mode = #tpu.pipeline_mode<synchronous>, transform_indices = @transform_1, window_bounds = array<i64: 3, 4, 32, 8>}, {pipeline_mode = #tpu.pipeline_mode<synchronous>, transform_indices = @transform_2, window_bounds = array<i64: 3, 4, 1, 8>}, {transform_indices = @transform_3, window_bounds = array<i64: 1, 8, 32>}]} {
    %c0 = arith.constant 0 : index
    %c0_0 = arith.constant 0 : index
    %c0_1 = arith.constant 0 : index
    %0 = vector.load %arg1[%c0, %c0_0, %c0_1] : memref<1x8x32xf32, #tpu.memory_space<vmem>>, vector<1x8x32xf32>
    %1 = vector.shape_cast %0 : vector<1x8x32xf32> to vector<8x32xf32>
    %c0_2 = arith.constant 0 : index
    %c0_3 = arith.constant 0 : index
    %c0_4 = arith.constant 0 : index
    %c0_5 = arith.constant 0 : index
    %2 = vector.load %arg2[%c0_2, %c0_3, %c0_4, %c0_5] : memref<3x4x32x8xf32, #tpu.memory_space<vmem>>, vector<1x1x32x8xf32>
    %3 = vector.shape_cast %2 : vector<1x1x32x8xf32> to vector<32x8xf32>
    %cst = arith.constant dense<0.000000e+00> : vector<8x8xf32>
    %4 = tpu.matmul %1, %3, %cst {dimension_numbers = #tpu.dot_dimension_numbers<[1], [0], [0], [1], [0, 0, 1, 1], [], []>} : vector<8x32xf32>, vector<32x8xf32>, vector<8x8xf32> -> vector<8x8xf32>
    %c0_6 = arith.constant 0 : index
    %c0_7 = arith.constant 0 : index
    %c0_8 = arith.constant 0 : index
    %c0_9 = arith.constant 0 : index
    %5 = vector.load %arg3[%c0_6, %c0_7, %c0_8, %c0_9] : memref<3x4x1x8xf32, #tpu.memory_space<vmem>>, vector<1x1x1x8xf32>
    %6 = vector.shape_cast %5 : vector<1x1x1x8xf32> to vector<1x8xf32>
    %7 = vector.broadcast %6 : vector<1x8xf32> to vector<8x8xf32>
    %8 = arith.addf %4, %7 : vector<8x8xf32>
    %cst_10 = arith.constant 0.353553385 : f32
    %9 = vector.broadcast %cst_10 : f32 to vector<8x8xf32>
    %10 = arith.mulf %8, %9 : vector<8x8xf32>
    %c1 = arith.constant 1 : index
    %c0_11 = arith.constant 0 : index
    %c0_12 = arith.constant 0 : index
    %c0_13 = arith.constant 0 : index
    %11 = vector.load %arg2[%c1, %c0_11, %c0_12, %c0_13] : memref<3x4x32x8xf32, #tpu.memory_space<vmem>>, vector<1x1x32x8xf32>
    %12 = vector.shape_cast %11 : vector<1x1x32x8xf32> to vector<32x8xf32>
    %cst_14 = arith.constant dense<0.000000e+00> : vector<8x8xf32>
    %13 = tpu.matmul %1, %12, %cst_14 {dimension_numbers = #tpu.dot_dimension_numbers<[1], [0], [0], [1], [0, 0, 1, 1], [], []>} : vector<8x32xf32>, vector<32x8xf32>, vector<8x8xf32> -> vector<8x8xf32>
    %c1_15 = arith.constant 1 : index
    %c0_16 = arith.constant 0 : index
    %c0_17 = arith.constant 0 : index
    %c0_18 = arith.constant 0 : index
    %14 = vector.load %arg3[%c1_15, %c0_16, %c0_17, %c0_18] : memref<3x4x1x8xf32, #tpu.memory_space<vmem>>, vector<1x1x1x8xf32>
    %15 = vector.shape_cast %14 : vector<1x1x1x8xf32> to vector<1x8xf32>
    %16 = vector.broadcast %15 : vector<1x8xf32> to vector<8x8xf32>
    %17 = arith.addf %13, %16 : vector<8x8xf32>
    %c2 = arith.constant 2 : index
    %c0_19 = arith.constant 0 : index
    %c0_20 = arith.constant 0 : index
    %c0_21 = arith.constant 0 : index
    %18 = vector.load %arg2[%c2, %c0_19, %c0_20, %c0_21] : memref<3x4x32x8xf32, #tpu.memory_space<vmem>>, vector<1x1x32x8xf32>
    %19 = vector.shape_cast %18 : vector<1x1x32x8xf32> to vector<32x8xf32>
    %cst_22 = arith.constant dense<0.000000e+00> : vector<8x8xf32>
    %20 = tpu.matmul %1, %19, %cst_22 {dimension_numbers = #tpu.dot_dimension_numbers<[1], [0], [0], [1], [0, 0, 1, 1], [], []>} : vector<8x32xf32>, vector<32x8xf32>, vector<8x8xf32> -> vector<8x8xf32>
    %c2_23 = arith.constant 2 : index
    %c0_24 = arith.constant 0 : index
    %c0_25 = arith.constant 0 : index
    %c0_26 = arith.constant 0 : index
    %21 = vector.load %arg3[%c2_23, %c0_24, %c0_25, %c0_26] : memref<3x4x1x8xf32, #tpu.memory_space<vmem>>, vector<1x1x1x8xf32>
    %22 = vector.shape_cast %21 : vector<1x1x1x8xf32> to vector<1x8xf32>
    %23 = vector.broadcast %22 : vector<1x8xf32> to vector<8x8xf32>
    %24 = arith.addf %20, %23 : vector<8x8xf32>
    %cst_27 = arith.constant dense<0.000000e+00> : vector<8x8xf32>
    %25 = tpu.matmul %10, %17, %cst_27 {dimension_numbers = #tpu.dot_dimension_numbers<[1], [1], [0], [0], [0, 0, 1, 0], [], []>} : vector<8x8xf32>, vector<8x8xf32>, vector<8x8xf32> -> vector<8x8xf32>
    %cst_28 = arith.constant dense<0xFF800000> : vector<8xf32>
    %26 = vector.multi_reduction <maximumf>, %25, %cst_28 [1] : vector<8x8xf32> to vector<8xf32>
    %27 = vector.shape_cast %26 : vector<8xf32> to vector<8x1xf32>
    %28 = vector.broadcast %27 : vector<8x1xf32> to vector<8x8xf32>
    %29 = arith.subf %25, %28 : vector<8x8xf32>
    %30 = math.exp %29 : vector<8x8xf32>
    %cst_29 = arith.constant dense<0.000000e+00> : vector<8xf32>
    %31 = vector.multi_reduction <add>, %30, %cst_29 [1] : vector<8x8xf32> to vector<8xf32>
    %32 = vector.shape_cast %31 : vector<8xf32> to vector<8x1xf32>
    %33 = vector.broadcast %32 : vector<8x1xf32> to vector<8x8xf32>
    %34 = arith.divf %30, %33 : vector<8x8xf32>
    %cst_30 = arith.constant dense<0.000000e+00> : vector<8x8xf32>
    %35 = tpu.matmul %34, %24, %cst_30 {dimension_numbers = #tpu.dot_dimension_numbers<[1], [0], [0], [1], [0, 0, 1, 1], [], []>} : vector<8x8xf32>, vector<8x8xf32>, vector<8x8xf32> -> vector<8x8xf32>
    %c0_31 = arith.constant 0 : index
    %c0_32 = arith.constant 0 : index
    %c0_33 = arith.constant 0 : index
    %36 = vector.load %arg4[%c0_31, %c0_32, %c0_33] : memref<1x8x32xf32, #tpu.memory_space<vmem>>, vector<1x8x8xf32>
    %37 = vector.shape_cast %36 : vector<1x8x8xf32> to vector<8x8xf32>
    %38 = vector.shape_cast %35 : vector<8x8xf32> to vector<1x8x8xf32>
    tpu.vector_store %arg4[%c0_31, %c0_32, %c0_33], %38 {strides = array<i32>} : memref<1x8x32xf32, #tpu.memory_space<vmem>>, vector<1x8x8xf32>,
    %c0_34 = arith.constant 0 : index
    %c1_35 = arith.constant 1 : index
    %c0_36 = arith.constant 0 : index
    %c0_37 = arith.constant 0 : index
    %39 = vector.load %arg2[%c0_34, %c1_35, %c0_36, %c0_37] : memref<3x4x32x8xf32, #tpu.memory_space<vmem>>, vector<1x1x32x8xf32>
    %40 = vector.shape_cast %39 : vector<1x1x32x8xf32> to vector<32x8xf32>
    %cst_38 = arith.constant dense<0.000000e+00> : vector<8x8xf32>
    %41 = tpu.matmul %1, %40, %cst_38 {dimension_numbers = #tpu.dot_dimension_numbers<[1], [0], [0], [1], [0, 0, 1, 1], [], []>} : vector<8x32xf32>, vector<32x8xf32>, vector<8x8xf32> -> vector<8x8xf32>
    %c0_39 = arith.constant 0 : index
    %c1_40 = arith.constant 1 : index
    %c0_41 = arith.constant 0 : index
    %c0_42 = arith.constant 0 : index
    %42 = vector.load %arg3[%c0_39, %c1_40, %c0_41, %c0_42] : memref<3x4x1x8xf32, #tpu.memory_space<vmem>>, vector<1x1x1x8xf32>
    %43 = vector.shape_cast %42 : vector<1x1x1x8xf32> to vector<1x8xf32>
    %44 = vector.broadcast %43 : vector<1x8xf32> to vector<8x8xf32>
    %45 = arith.addf %41, %44 : vector<8x8xf32>
    %cst_43 = arith.constant 0.353553385 : f32
    %46 = vector.broadcast %cst_43 : f32 to vector<8x8xf32>
    %47 = arith.mulf %45, %46 : vector<8x8xf32>
    %c1_44 = arith.constant 1 : index
    %c1_45 = arith.constant 1 : index
    %c0_46 = arith.constant 0 : index
    %c0_47 = arith.constant 0 : index
    %48 = vector.load %arg2[%c1_44, %c1_45, %c0_46, %c0_47] : memref<3x4x32x8xf32, #tpu.memory_space<vmem>>, vector<1x1x32x8xf32>
    %49 = vector.shape_cast %48 : vector<1x1x32x8xf32> to vector<32x8xf32>
    %cst_48 = arith.constant dense<0.000000e+00> : vector<8x8xf32>
    %50 = tpu.matmul %1, %49, %cst_48 {dimension_numbers = #tpu.dot_dimension_numbers<[1], [0], [0], [1], [0, 0, 1, 1], [], []>} : vector<8x32xf32>, vector<32x8xf32>, vector<8x8xf32> -> vector<8x8xf32>
    %c1_49 = arith.constant 1 : index
    %c1_50 = arith.constant 1 : index
    %c0_51 = arith.constant 0 : index
    %c0_52 = arith.constant 0 : index
    %51 = vector.load %arg3[%c1_49, %c1_50, %c0_51, %c0_52] : memref<3x4x1x8xf32, #tpu.memory_space<vmem>>, vector<1x1x1x8xf32>
    %52 = vector.shape_cast %51 : vector<1x1x1x8xf32> to vector<1x8xf32>
    %53 = vector.broadcast %52 : vector<1x8xf32> to vector<8x8xf32>
    %54 = arith.addf %50, %53 : vector<8x8xf32>
    %c2_53 = arith.constant 2 : index
    %c1_54 = arith.constant 1 : index
    %c0_55 = arith.constant 0 : index
    %c0_56 = arith.constant 0 : index
    %55 = vector.load %arg2[%c2_53, %c1_54, %c0_55, %c0_56] : memref<3x4x32x8xf32, #tpu.memory_space<vmem>>, vector<1x1x32x8xf32>
    %56 = vector.shape_cast %55 : vector<1x1x32x8xf32> to vector<32x8xf32>
    %cst_57 = arith.constant dense<0.000000e+00> : vector<8x8xf32>
    %57 = tpu.matmul %1, %56, %cst_57 {dimension_numbers = #tpu.dot_dimension_numbers<[1], [0], [0], [1], [0, 0, 1, 1], [], []>} : vector<8x32xf32>, vector<32x8xf32>, vector<8x8xf32> -> vector<8x8xf32>
    %c2_58 = arith.constant 2 : index
    %c1_59 = arith.constant 1 : index
    %c0_60 = arith.constant 0 : index
    %c0_61 = arith.constant 0 : index
    %58 = vector.load %arg3[%c2_58, %c1_59, %c0_60, %c0_61] : memref<3x4x1x8xf32, #tpu.memory_space<vmem>>, vector<1x1x1x8xf32>
    %59 = vector.shape_cast %58 : vector<1x1x1x8xf32> to vector<1x8xf32>
    %60 = vector.broadcast %59 : vector<1x8xf32> to vector<8x8xf32>
    %61 = arith.addf %57, %60 : vector<8x8xf32>
    %cst_62 = arith.constant dense<0.000000e+00> : vector<8x8xf32>
    %62 = tpu.matmul %47, %54, %cst_62 {dimension_numbers = #tpu.dot_dimension_numbers<[1], [1], [0], [0], [0, 0, 1, 0], [], []>} : vector<8x8xf32>, vector<8x8xf32>, vector<8x8xf32> -> vector<8x8xf32>
    %cst_63 = arith.constant dense<0xFF800000> : vector<8xf32>
    %63 = vector.multi_reduction <maximumf>, %62, %cst_63 [1] : vector<8x8xf32> to vector<8xf32>
    %64 = vector.shape_cast %63 : vector<8xf32> to vector<8x1xf32>
    %65 = vector.broadcast %64 : vector<8x1xf32> to vector<8x8xf32>
    %66 = arith.subf %62, %65 : vector<8x8xf32>
    %67 = math.exp %66 : vector<8x8xf32>
    %cst_64 = arith.constant dense<0.000000e+00> : vector<8xf32>
    %68 = vector.multi_reduction <add>, %67, %cst_64 [1] : vector<8x8xf32> to vector<8xf32>
    %69 = vector.shape_cast %68 : vector<8xf32> to vector<8x1xf32>
    %70 = vector.broadcast %69 : vector<8x1xf32> to vector<8x8xf32>
    %71 = arith.divf %67, %70 : vector<8x8xf32>
    %cst_65 = arith.constant dense<0.000000e+00> : vector<8x8xf32>
    %72 = tpu.matmul %71, %61, %cst_65 {dimension_numbers = #tpu.dot_dimension_numbers<[1], [0], [0], [1], [0, 0, 1, 1], [], []>} : vector<8x8xf32>, vector<8x8xf32>, vector<8x8xf32> -> vector<8x8xf32>
    %c0_66 = arith.constant 0 : index
    %c0_67 = arith.constant 0 : index
    %c8 = arith.constant 8 : index
    %73 = vector.load %arg4[%c0_66, %c0_67, %c8] : memref<1x8x32xf32, #tpu.memory_space<vmem>>, vector<1x8x8xf32>
    %74 = vector.shape_cast %73 : vector<1x8x8xf32> to vector<8x8xf32>
    %75 = vector.shape_cast %72 : vector<8x8xf32> to vector<1x8x8xf32>
    tpu.vector_store %arg4[%c0_66, %c0_67, %c8], %75 {strides = array<i32>} : memref<1x8x32xf32, #tpu.memory_space<vmem>>, vector<1x8x8xf32>,
    %c0_68 = arith.constant 0 : index
    %c2_69 = arith.constant 2 : index
    %c0_70 = arith.constant 0 : index
    %c0_71 = arith.constant 0 : index
    %76 = vector.load %arg2[%c0_68, %c2_69, %c0_70, %c0_71] : memref<3x4x32x8xf32, #tpu.memory_space<vmem>>, vector<1x1x32x8xf32>
    %77 = vector.shape_cast %76 : vector<1x1x32x8xf32> to vector<32x8xf32>
    %cst_72 = arith.constant dense<0.000000e+00> : vector<8x8xf32>
    %78 = tpu.matmul %1, %77, %cst_72 {dimension_numbers = #tpu.dot_dimension_numbers<[1], [0], [0], [1], [0, 0, 1, 1], [], []>} : vector<8x32xf32>, vector<32x8xf32>, vector<8x8xf32> -> vector<8x8xf32>
    %c0_73 = arith.constant 0 : index
    %c2_74 = arith.constant 2 : index
    %c0_75 = arith.constant 0 : index
    %c0_76 = arith.constant 0 : index
    %79 = vector.load %arg3[%c0_73, %c2_74, %c0_75, %c0_76] : memref<3x4x1x8xf32, #tpu.memory_space<vmem>>, vector<1x1x1x8xf32>
    %80 = vector.shape_cast %79 : vector<1x1x1x8xf32> to vector<1x8xf32>
    %81 = vector.broadcast %80 : vector<1x8xf32> to vector<8x8xf32>
    %82 = arith.addf %78, %81 : vector<8x8xf32>
    %cst_77 = arith.constant 0.353553385 : f32
    %83 = vector.broadcast %cst_77 : f32 to vector<8x8xf32>
    %84 = arith.mulf %82, %83 : vector<8x8xf32>
    %c1_78 = arith.constant 1 : index
    %c2_79 = arith.constant 2 : index
    %c0_80 = arith.constant 0 : index
    %c0_81 = arith.constant 0 : index
    %85 = vector.load %arg2[%c1_78, %c2_79, %c0_80, %c0_81] : memref<3x4x32x8xf32, #tpu.memory_space<vmem>>, vector<1x1x32x8xf32>
    %86 = vector.shape_cast %85 : vector<1x1x32x8xf32> to vector<32x8xf32>
    %cst_82 = arith.constant dense<0.000000e+00> : vector<8x8xf32>
    %87 = tpu.matmul %1, %86, %cst_82 {dimension_numbers = #tpu.dot_dimension_numbers<[1], [0], [0], [1], [0, 0, 1, 1], [], []>} : vector<8x32xf32>, vector<32x8xf32>, vector<8x8xf32> -> vector<8x8xf32>
    %c1_83 = arith.constant 1 : index
    %c2_84 = arith.constant 2 : index
    %c0_85 = arith.constant 0 : index
    %c0_86 = arith.constant 0 : index
    %88 = vector.load %arg3[%c1_83, %c2_84, %c0_85, %c0_86] : memref<3x4x1x8xf32, #tpu.memory_space<vmem>>, vector<1x1x1x8xf32>
    %89 = vector.shape_cast %88 : vector<1x1x1x8xf32> to vector<1x8xf32>
    %90 = vector.broadcast %89 : vector<1x8xf32> to vector<8x8xf32>
    %91 = arith.addf %87, %90 : vector<8x8xf32>
    %c2_87 = arith.constant 2 : index
    %c2_88 = arith.constant 2 : index
    %c0_89 = arith.constant 0 : index
    %c0_90 = arith.constant 0 : index
    %92 = vector.load %arg2[%c2_87, %c2_88, %c0_89, %c0_90] : memref<3x4x32x8xf32, #tpu.memory_space<vmem>>, vector<1x1x32x8xf32>
    %93 = vector.shape_cast %92 : vector<1x1x32x8xf32> to vector<32x8xf32>
    %cst_91 = arith.constant dense<0.000000e+00> : vector<8x8xf32>
    %94 = tpu.matmul %1, %93, %cst_91 {dimension_numbers = #tpu.dot_dimension_numbers<[1], [0], [0], [1], [0, 0, 1, 1], [], []>} : vector<8x32xf32>, vector<32x8xf32>, vector<8x8xf32> -> vector<8x8xf32>
    %c2_92 = arith.constant 2 : index
    %c2_93 = arith.constant 2 : index
    %c0_94 = arith.constant 0 : index
    %c0_95 = arith.constant 0 : index
    %95 = vector.load %arg3[%c2_92, %c2_93, %c0_94, %c0_95] : memref<3x4x1x8xf32, #tpu.memory_space<vmem>>, vector<1x1x1x8xf32>
    %96 = vector.shape_cast %95 : vector<1x1x1x8xf32> to vector<1x8xf32>
    %97 = vector.broadcast %96 : vector<1x8xf32> to vector<8x8xf32>
    %98 = arith.addf %94, %97 : vector<8x8xf32>
    %cst_96 = arith.constant dense<0.000000e+00> : vector<8x8xf32>
    %99 = tpu.matmul %84, %91, %cst_96 {dimension_numbers = #tpu.dot_dimension_numbers<[1], [1], [0], [0], [0, 0, 1, 0], [], []>} : vector<8x8xf32>, vector<8x8xf32>, vector<8x8xf32> -> vector<8x8xf32>
    %cst_97 = arith.constant dense<0xFF800000> : vector<8xf32>
    %100 = vector.multi_reduction <maximumf>, %99, %cst_97 [1] : vector<8x8xf32> to vector<8xf32>
    %101 = vector.shape_cast %100 : vector<8xf32> to vector<8x1xf32>
    %102 = vector.broadcast %101 : vector<8x1xf32> to vector<8x8xf32>
    %103 = arith.subf %99, %102 : vector<8x8xf32>
    %104 = math.exp %103 : vector<8x8xf32>
    %cst_98 = arith.constant dense<0.000000e+00> : vector<8xf32>
    %105 = vector.multi_reduction <add>, %104, %cst_98 [1] : vector<8x8xf32> to vector<8xf32>
    %106 = vector.shape_cast %105 : vector<8xf32> to vector<8x1xf32>
    %107 = vector.broadcast %106 : vector<8x1xf32> to vector<8x8xf32>
    %108 = arith.divf %104, %107 : vector<8x8xf32>
    %cst_99 = arith.constant dense<0.000000e+00> : vector<8x8xf32>
    %109 = tpu.matmul %108, %98, %cst_99 {dimension_numbers = #tpu.dot_dimension_numbers<[1], [0], [0], [1], [0, 0, 1, 1], [], []>} : vector<8x8xf32>, vector<8x8xf32>, vector<8x8xf32> -> vector<8x8xf32>
    %c0_100 = arith.constant 0 : index
    %c0_101 = arith.constant 0 : index
    %c16 = arith.constant 16 : index
    %110 = vector.load %arg4[%c0_100, %c0_101, %c16] : memref<1x8x32xf32, #tpu.memory_space<vmem>>, vector<1x8x8xf32>
    %111 = vector.shape_cast %110 : vector<1x8x8xf32> to vector<8x8xf32>
    %112 = vector.shape_cast %109 : vector<8x8xf32> to vector<1x8x8xf32>
    tpu.vector_store %arg4[%c0_100, %c0_101, %c16], %112 {strides = array<i32>} : memref<1x8x32xf32, #tpu.memory_space<vmem>>, vector<1x8x8xf32>,
    %c0_102 = arith.constant 0 : index
    %c3 = arith.constant 3 : index
    %c0_103 = arith.constant 0 : index
    %c0_104 = arith.constant 0 : index
    %113 = vector.load %arg2[%c0_102, %c3, %c0_103, %c0_104] : memref<3x4x32x8xf32, #tpu.memory_space<vmem>>, vector<1x1x32x8xf32>
    %114 = vector.shape_cast %113 : vector<1x1x32x8xf32> to vector<32x8xf32>
    %cst_105 = arith.constant dense<0.000000e+00> : vector<8x8xf32>
    %115 = tpu.matmul %1, %114, %cst_105 {dimension_numbers = #tpu.dot_dimension_numbers<[1], [0], [0], [1], [0, 0, 1, 1], [], []>} : vector<8x32xf32>, vector<32x8xf32>, vector<8x8xf32> -> vector<8x8xf32>
    %c0_106 = arith.constant 0 : index
    %c3_107 = arith.constant 3 : index
    %c0_108 = arith.constant 0 : index
    %c0_109 = arith.constant 0 : index
    %116 = vector.load %arg3[%c0_106, %c3_107, %c0_108, %c0_109] : memref<3x4x1x8xf32, #tpu.memory_space<vmem>>, vector<1x1x1x8xf32>
    %117 = vector.shape_cast %116 : vector<1x1x1x8xf32> to vector<1x8xf32>
    %118 = vector.broadcast %117 : vector<1x8xf32> to vector<8x8xf32>
    %119 = arith.addf %115, %118 : vector<8x8xf32>
    %cst_110 = arith.constant 0.353553385 : f32
    %120 = vector.broadcast %cst_110 : f32 to vector<8x8xf32>
    %121 = arith.mulf %119, %120 : vector<8x8xf32>
    %c1_111 = arith.constant 1 : index
    %c3_112 = arith.constant 3 : index
    %c0_113 = arith.constant 0 : index
    %c0_114 = arith.constant 0 : index
    %122 = vector.load %arg2[%c1_111, %c3_112, %c0_113, %c0_114] : memref<3x4x32x8xf32, #tpu.memory_space<vmem>>, vector<1x1x32x8xf32>
    %123 = vector.shape_cast %122 : vector<1x1x32x8xf32> to vector<32x8xf32>
    %cst_115 = arith.constant dense<0.000000e+00> : vector<8x8xf32>
    %124 = tpu.matmul %1, %123, %cst_115 {dimension_numbers = #tpu.dot_dimension_numbers<[1], [0], [0], [1], [0, 0, 1, 1], [], []>} : vector<8x32xf32>, vector<32x8xf32>, vector<8x8xf32> -> vector<8x8xf32>
    %c1_116 = arith.constant 1 : index
    %c3_117 = arith.constant 3 : index
    %c0_118 = arith.constant 0 : index
    %c0_119 = arith.constant 0 : index
    %125 = vector.load %arg3[%c1_116, %c3_117, %c0_118, %c0_119] : memref<3x4x1x8xf32, #tpu.memory_space<vmem>>, vector<1x1x1x8xf32>
    %126 = vector.shape_cast %125 : vector<1x1x1x8xf32> to vector<1x8xf32>
    %127 = vector.broadcast %126 : vector<1x8xf32> to vector<8x8xf32>
    %128 = arith.addf %124, %127 : vector<8x8xf32>
    %c2_120 = arith.constant 2 : index
    %c3_121 = arith.constant 3 : index
    %c0_122 = arith.constant 0 : index
    %c0_123 = arith.constant 0 : index
    %129 = vector.load %arg2[%c2_120, %c3_121, %c0_122, %c0_123] : memref<3x4x32x8xf32, #tpu.memory_space<vmem>>, vector<1x1x32x8xf32>
    %130 = vector.shape_cast %129 : vector<1x1x32x8xf32> to vector<32x8xf32>
    %cst_124 = arith.constant dense<0.000000e+00> : vector<8x8xf32>
    %131 = tpu.matmul %1, %130, %cst_124 {dimension_numbers = #tpu.dot_dimension_numbers<[1], [0], [0], [1], [0, 0, 1, 1], [], []>} : vector<8x32xf32>, vector<32x8xf32>, vector<8x8xf32> -> vector<8x8xf32>
    %c2_125 = arith.constant 2 : index
    %c3_126 = arith.constant 3 : index
    %c0_127 = arith.constant 0 : index
    %c0_128 = arith.constant 0 : index
    %132 = vector.load %arg3[%c2_125, %c3_126, %c0_127, %c0_128] : memref<3x4x1x8xf32, #tpu.memory_space<vmem>>, vector<1x1x1x8xf32>
    %133 = vector.shape_cast %132 : vector<1x1x1x8xf32> to vector<1x8xf32>
    %134 = vector.broadcast %133 : vector<1x8xf32> to vector<8x8xf32>
    %135 = arith.addf %131, %134 : vector<8x8xf32>
    %cst_129 = arith.constant dense<0.000000e+00> : vector<8x8xf32>
    %136 = tpu.matmul %121, %128, %cst_129 {dimension_numbers = #tpu.dot_dimension_numbers<[1], [1], [0], [0], [0, 0, 1, 0], [], []>} : vector<8x8xf32>, vector<8x8xf32>, vector<8x8xf32> -> vector<8x8xf32>
    %cst_130 = arith.constant dense<0xFF800000> : vector<8xf32>
    %137 = vector.multi_reduction <maximumf>, %136, %cst_130 [1] : vector<8x8xf32> to vector<8xf32>
    %138 = vector.shape_cast %137 : vector<8xf32> to vector<8x1xf32>
    %139 = vector.broadcast %138 : vector<8x1xf32> to vector<8x8xf32>
    %140 = arith.subf %136, %139 : vector<8x8xf32>
    %141 = math.exp %140 : vector<8x8xf32>
    %cst_131 = arith.constant dense<0.000000e+00> : vector<8xf32>
    %142 = vector.multi_reduction <add>, %141, %cst_131 [1] : vector<8x8xf32> to vector<8xf32>
    %143 = vector.shape_cast %142 : vector<8xf32> to vector<8x1xf32>
    %144 = vector.broadcast %143 : vector<8x1xf32> to vector<8x8xf32>
    %145 = arith.divf %141, %144 : vector<8x8xf32>
    %cst_132 = arith.constant dense<0.000000e+00> : vector<8x8xf32>
    %146 = tpu.matmul %145, %135, %cst_132 {dimension_numbers = #tpu.dot_dimension_numbers<[1], [0], [0], [1], [0, 0, 1, 1], [], []>} : vector<8x8xf32>, vector<8x8xf32>, vector<8x8xf32> -> vector<8x8xf32>
    %c0_133 = arith.constant 0 : index
    %c0_134 = arith.constant 0 : index
    %c24 = arith.constant 24 : index
    %147 = vector.load %arg4[%c0_133, %c0_134, %c24] : memref<1x8x32xf32, #tpu.memory_space<vmem>>, vector<1x8x8xf32>
    %148 = vector.shape_cast %147 : vector<1x8x8xf32> to vector<8x8xf32>
    %149 = vector.shape_cast %146 : vector<8x8xf32> to vector<1x8x8xf32>
    tpu.vector_store %arg4[%c0_133, %c0_134, %c24], %149 {strides = array<i32>} : memref<1x8x32xf32, #tpu.memory_space<vmem>>, vector<1x8x8xf32>,
    return
  }
  func.func @transform_0(%arg0: i32) -> (i32, i32, i32) {
    %c0_i32 = arith.constant 0 : i32
    %c0_i32_0 = arith.constant 0 : i32
    %c0_i32_1 = arith.constant 0 : i32
    return %arg0, %c0_i32, %c0_i32_0 : i32, i32, i32
  }
  func.func @transform_1(%arg0: i32) -> (i32, i32, i32, i32) {
    %c0_i32 = arith.constant 0 : i32
    %c0_i32_0 = arith.constant 0 : i32
    %c0_i32_1 = arith.constant 0 : i32
    %c0_i32_2 = arith.constant 0 : i32
    %c0_i32_3 = arith.constant 0 : i32
    return %c0_i32, %c0_i32_0, %c0_i32_1, %c0_i32_2 : i32, i32, i32, i32
  }
  func.func @transform_2(%arg0: i32) -> (i32, i32, i32, i32) {
    %c0_i32 = arith.constant 0 : i32
    %c0_i32_0 = arith.constant 0 : i32
    %c0_i32_1 = arith.constant 0 : i32
    %c0_i32_2 = arith.constant 0 : i32
    %c0_i32_3 = arith.constant 0 : i32
    return %c0_i32, %c0_i32_0, %c0_i32_1, %c0_i32_2 : i32, i32, i32, i32
  }
  func.func @transform_3(%arg0: i32) -> (i32, i32, i32) {
    %c0_i32 = arith.constant 0 : i32
    %c0_i32_0 = arith.constant 0 : i32
    %c0_i32_1 = arith.constant 0 : i32
    return %arg0, %c0_i32, %c0_i32_0 : i32, i32, i32
  }
}

</mosaic_0001>

<bundles_post_ra>
// kernel: tpu_custom_call.1
= control target key start
LH: loop header
LB: loop body
LE: loop exit
PB: predicated region body
PF: predicated region fallthrough
CT: control target
= control target key end

     0   :  { %8 = vsyncpa [#allocation3], 0  ;;  %s1489_s0 = inlined_call_operand.vmem [shape: f32[2,8,32], index: 0, kind: input, shape index: {}]   ;;  %s1490_s1 = inlined_call_operand.vmem [shape: f32[3,4,32,8], index: 1, kind: input, shape index: {}]   ;;  %s1491_s2 = inlined_call_operand.vmem [shape: f32[3,4,1,8], index: 2, kind: input, shape index: {}]   ;;  %s1492_s3 = inlined_call_operand.hbm [shape: f32[2,8,32], index: 3, kind: output, shape index: {}]  }
   0x1   :  { %10 = vsyncpa [#allocation3 + $0x1], 0  ;;  %s1166_s12 = smov 0   ;;  %s1168_s13 = smov 0  }
   0x2   :  { %s1170_s14 = smov 0   ;;  %s1172_s15 = smov 0  }
   0x3 LB: > { %s1187_s16 = sadd.s32 4294967295, %s1141_s15   ;;  %s920_s17 = sadd.s32 4294967294, %s1141_s15   ;;  %s1141_s15 = sphi %s1172_s15, %s1498_s15   ;;  %s1137_s14 = sphi %s1170_s14, %s1497_s14   ;;  %s1133_s13 = sphi %s1168_s13, %s1496_s13   ;;  %s1129_s12 = sphi %s1166_s12, %s1495_s12  }
   0x4   : > { %s1191_s18 = sadd.s32 1, %s1141_s15   ;;  %s91_s19 = sadd.s32 1, %s1137_s14 }
   0x5   : > { %s88_s20 = ssub.s32 %s1141_s15, %s1191_s18  ;;  %p101_p0 = scmp.ne.s32.totalorder %s1137_s14, %s1133_s13 }
   0x6   : > { %p89_p1 = scmp.eq.s32.totalorder %s88_s20, 0  ;;  %p102_p2 = scmp.eq.s32.totalorder %s1187_s16, 1 }
   0x7   : > { %p107_p3 = scmp.ne.s32.totalorder %s1133_s13, %s1129_s12  ;;  %p108_p4 = scmp.eq.s32.totalorder %s920_s17, 1 }
   0x8   : > { %s1202_s21 = scalar_select %p89_p1, %s1137_s14, %s91_s19  }
   0x9   : > { %p1204_p5 = por %p102_p2, %p101_p0  ;;  %p1208_p6 = por %p108_p4, %p107_p3 }
   0xa   : > { %p923_p7 = scmp.ge.s32.totalorder %s1141_s15, 1  ;;  %p139_p8 = scmp.lt.s32.totalorder %s1141_s15, 3 }
   0xc   : > { %p140_p9 = pnand %p923_p7, %p139_p8 }
   0xd   : > { %p162_p10 = scmp.lt.s32.totalorder (!%p140_p9), %s1187_s16, 1  ;;  %s159_s27 = sand.u32 (!%p140_p9), 1, %s1133_s13  }
   0xe   : > { %143 = sbr.rel (%p140_p9) target bundleno = 2004 (0x7d4), region = 32  ;;  %s924_s28 = sshll.u32 (!%p140_p9), %s159_s27, 3 }
   0xf   : > { %s1319_s29 = scalar_lea.vmem (!%p140_p9), [#allocation2], %s924_s28  ;;  %s1143_s7 = smov (!%p140_p9), 8  }
  0x10   : > { %s1006_s10 = sshll.u32 (!%p140_p9), %s1187_s16, 3  ;;  %s846_s25 = scalar_lea.sflag (!%p140_p9), [#allocation3], %s159_s27 }
  0x11   : > { %s856_s19 = scalar_lea.hbm (!%p140_p9), %s1492_s3, %s1006_s10  ;;  %s1099_s4 = scalar_lea.hbm (!%p140_p9), %s1492_s3, 16 }
  0x12   : > { %s860_s24 = sshll.u32 (!%p140_p9), %s856_s19, 4  ;;  %s861_s24 = int_to_ptr.hbm [resolvable:$true] %s860_s24 }
  0x13   : > { %v930_v0 = vld [vmem:[%s1490_s1 + $0x98] sm:$0xff]  ;;  %v929_v2 = vld [vmem:[%s1490_s1 + $0x90] sm:$0xff]  ;;  %v928_v4 = vld [vmem:[%s1490_s1 + $0x88] sm:$0xff]  ;;  %s163_s9 = scalar_select %p162_p10, %s1187_s16, 1  ;;  %vm175_vm0 = vcmask 261120   ;;  %vm260_vm1 = vcmask 64512  }
  0x14   : > { %v170_v1 = vld [vmem:[%s1490_s1 + $0x18] sm:$0xff]  ;;  %222 = vmatpush.msra.mxu1 %v930_v0  ;;  %v169_v3 = vld [vmem:[%s1490_s1 + $0x10] sm:$0xff]  ;;  %v168_v5 = vld [vmem:[%s1490_s1 + $0x8] sm:$0xff]  ;;  %vm503_vm10 = vcmask 130112   ;;  %vm673_vm15 = vcmask 195712  }
  0x15   : > { %191 = vmatpush.msra.mxu0 %v170_v1  ;;  %v927_v6 = vld [vmem:[%s1490_s1 + $0x80] sm:$0xff]  ;;  %s925_s20 = sshll.u32 %s163_s9, 3  ;;  %v936_v16 = vld [vmem:[%s1490_s1 + $0x118] sm:$0xff]  ;;  %v935_v19 = vld [vmem:[%s1490_s1 + $0x110] sm:$0xff]  ;;  %s1145_s9 = smov 24  }
  0x16   : > { %223 = vmatpush.msra.mxu1 %v929_v2  ;;  %v167_v7 = vld [vmem:[%s1490_s1] sm:$0xff]  ;;  %s165_s26 = scalar_lea.vmem %s1489_s0, %s925_s20  ;;  %252 = vmatpush.msra.mxu2 %v936_v16  ;;  %v934_v20 = vld [vmem:[%s1490_s1 + $0x108] sm:$0xff]  ;;  %v951_v21 = vld [vmem:[%s1490_s1 + $0xb8] sm:$0xff]  ;;  %s1144_s20 = smov 16  }
  0x17   : > { %192 = vmatpush.msra.mxu0 %v169_v3  ;;  %v1243_v8 = vld [vmem:[%s165_s26] sm:$0xff]  ;;  %v950_v23 = vld [vmem:[%s1490_s1 + $0xb0] sm:$0xff]  ;;  %v949_v24 = vld [vmem:[%s1490_s1 + $0xa8] sm:$0xff]  ;;  %s1093_s26 = sshra.s32 %s861_s24, 4  ;;  %s1094_s26 = int_to_ptr.hbm [resolvable:$true] %s1093_s26 }
  0x18   : > { %224 = vmatpush.msra.mxu1 %v928_v4  ;;  %v1051_v9 = vld [vmem:[%s1491_s2 + $0x4] ss:$0 sm:$0xff]  ;;  %v1052_v10 = vld [vmem:[%s1491_s2] ss:$0 sm:$0xff]  ;;  %253 = vmatpush.msra.mxu2 %v935_v19  ;;  %v945_v25 = vld [vmem:[%s1490_s1 + $0x38] sm:$0xff]  ;;  %s1095_s28 = scalar_lea.hbm %s1094_s26, 8  ;;  %p1100_p0 = scmp.lt.s32.totalorder %s1094_s26, %s1492_s3 }
  0x19   : > { %193 = vmatpush.msra.mxu0 %v168_v5  ;;  %v933_v22 = vld [vmem:[%s1490_s1 + $0x100] sm:$0xff]  ;;  %v944_v26 = vld [vmem:[%s1490_s1 + $0x30] sm:$0xff]  ;;  %v943_v28 = vld [vmem:[%s1490_s1 + $0x28] sm:$0xff]  ;;  %p1096_p11 = scmp.ne.s32.totalorder %s1094_s26, %s1095_s28  ;;  %p1101_p1 = scmp.lt.s32.totalorder %s1099_s4, %s1095_s28 }
  0x1a   : > { %225 = vmatpush.msra.mxu1 %v927_v6  ;;  %254 = vmatpush.msra.mxu2 %v934_v20  ;;  %v948_v27 = vld [vmem:[%s1490_s1 + $0xa0] sm:$0xff]  ;;  %v1053_v35 = vld [vmem:[%s1491_s2 + $0x8] ss:$0 sm:$0xff]  ;;  %v957_v57 = vld [vmem:[%s1490_s1 + $0x138] sm:$0xff] }
  0x1b   : > { %194 = vmatpush.msra.mxu0 %v167_v7  ;;  %932 = vmatmul.msk.f32.vlgmr.msra.gmra.mxu1 %vm175_vm0, %v1243_v8  ;;  %v942_v29 = vld [vmem:[%s1490_s1 + $0x20] sm:$0xff]  ;;  %v956_v61 = vld [vmem:[%s1490_s1 + $0x130] sm:$0xff]  ;;  %v955_v62 = vld [vmem:[%s1490_s1 + $0x128] sm:$0xff]  ;;  %p1097_p12 = pnand %p1096_p11, %p1204_p5  ;;  %p1102_p2 = por %p1101_p1, %p1100_p0 }
  0x1c   : > { %926 = vmatmul.msk.f32.vlgmr.msra.gmra.mxu0 %vm175_vm0, %v1243_v8  ;;  %388 = vmatpush.msrb.mxu1 %v951_v21  ;;  %v1054_v37 = vld [vmem:[%s1491_s2 + $0x5] ss:$0 sm:$0xff]  ;;  %v1055_v51 = vld [vmem:[%s1491_s2 + $0x1] ss:$0 sm:$0xff]  ;;  %v972_v0 = vld [vmem:[%s1490_s1 + $0xd8] sm:$0xff] }
  0x1d   : > { %255 = vmatpush.msra.mxu2 %v933_v22  ;;  %357 = vmatpush.msrb.mxu0 %v945_v25  ;;  %v954_v63 = vld [vmem:[%s1490_s1 + $0x120] sm:$0xff]  ;;  %v971_v1 = vld [vmem:[%s1490_s1 + $0xd0] sm:$0xff]  ;;  %v970_v2 = vld [vmem:[%s1490_s1 + $0xc8] sm:$0xff]  ;;  %p1098_p13 = pneg %p1097_p12 }
  0x1e   : > { %938 = vmatmul.msk.f32.vlgmr.msra.gmra.mxu2 %vm175_vm0, %v1243_v8  ;;  %389 = vmatpush.msrb.mxu1 %v950_v23  ;;  %v966_v3 = vld [vmem:[%s1490_s1 + $0x58] sm:$0xff]  ;;  %v965_v4 = vld [vmem:[%s1490_s1 + $0x50] sm:$0xff]  ;;  %v969_v5 = vld [vmem:[%s1490_s1 + $0xc0] sm:$0xff] }
  0x1f   : > { %358 = vmatpush.msrb.mxu0 %v944_v26  ;;  %418 = vmatpush.msrb.mxu2 %v957_v57  ;;  %v964_v6 = vld [vmem:[%s1490_s1 + $0x48] sm:$0xff]  ;;  %v963_v7 = vld [vmem:[%s1490_s1 + $0x40] sm:$0xff]  ;;  %p1103_p3 = pnand %p1102_p2, %p1098_p13 }
  0x20   : > { %390 = vmatpush.msrb.mxu1 %v949_v24 }
  0x21   : > { %359 = vmatpush.msrb.mxu0 %v943_v28  ;;  %419 = vmatpush.msrb.mxu2 %v956_v61 }
  0x22   : > { %391 = vmatpush.msrb.mxu1 %v948_v27 }
  0x23   : > { %953 = vmatmul.msk.f32.vlgmr.msrb.gmra.mxu1 %vm175_vm0, %v1243_v8  ;;  %360 = vmatpush.msrb.mxu0 %v942_v29 }
  0x24   : > { %947 = vmatmul.msk.f32.vlgmr.msrb.gmra.mxu0 %vm175_vm0, %v1243_v8  ;;  %420 = vmatpush.msrb.mxu2 %v955_v62 }
  0x25   : > { %527 = vmatpush.msra.mxu1 %v966_v3 }
  0x26   : > { %421 = vmatpush.msrb.mxu2 %v954_v63 }
  0x27   : > { %959 = vmatmul.msk.f32.vlgmr.msrb.gmra.mxu2 %vm175_vm0, %v1243_v8  ;;  %528 = vmatpush.msra.mxu1 %v965_v4 }
  0x28   : > { %558 = vmatpush.msra.mxu2 %v972_v0 }
  0x29   : > { %529 = vmatpush.msra.mxu1 %v964_v6 }
  0x2a   : > { %559 = vmatpush.msra.mxu2 %v971_v1 }
  0x2b   : > { %530 = vmatpush.msra.mxu1 %v963_v7 }
  0x2c   : > { %560 = vmatpush.msra.mxu2 %v970_v2  ;;  %968 = vmatmul.msk.f32.vlgmr.msra.gmra.mxu1 %vm175_vm0, %v1243_v8 }
  0x2e   : > { %561 = vmatpush.msra.mxu2 %v969_v5 }
  0x2f   : > { %974 = vmatmul.msk.f32.vlgmr.msra.gmra.mxu2 %vm175_vm0, %v1243_v8 }
  0x98   : > { %v227_v11 = vpop.f32.mrf.mxu1 }
  0x99   : > { %v196_v12 = vpop.f32.mrf.mxu0  ;;  %v228_v13 = vadd.f32 %v1051_v9, %v227_v11 }
  0x9a   : > { %v197_v14 = vadd.f32 %v1052_v10, %v196_v12 }
  0x9b   : > { %939 = vmatpush.xpose.msk.msra.mxu3 %vm260_vm1, %v228_v13 }
  0x9c   : > { %v199_v15 = vmul.f32 0.35355338, %v197_v14  ;;  %v1056_v14 = vld [vmem:[%s1491_s2 + $0x9] ss:$0 sm:$0xff] }
  0x9e   : > { %940 = vmatmul.msk.f32.vlgmr.msra.gmra.mxu3 %vm260_vm1, %v199_v15 }
  0xa0   : > { %v393_v39 = vpop.f32.mrf.mxu1 }
  0xa1   : > { %v257_v36 = vpop.f32.mrf.mxu2  ;;  %v394_v40 = vadd.f32 %v1054_v37, %v393_v39  ;;  %v362_v53 = vpop.f32.mrf.mxu0 }
  0xa2   : > { %v258_v38 = vadd.f32 %v1053_v35, %v257_v36  ;;  %v363_v55 = vadd.f32 %v1055_v51, %v362_v53  ;;  %v978_v36 = vld [vmem:[%s1490_s1 + $0x158] sm:$0xff] }
  0xa4   : > { %329 = vmatpush.msrb.mxu3 %v258_v38  ;;  %v365_v56 = vmul.f32 0.35355338, %v363_v55 }
  0xa6   : > { %960 = vmatpush.xpose.msk.msra.mxu3 %vm260_vm1, %v394_v40  ;;  %v977_v40 = vld [vmem:[%s1490_s1 + $0x150] sm:$0xff] }
  0xaa   : > { %v423_v15 = vpop.f32.mrf.mxu2 }
  0xab   : > { %v424_v16 = vadd.f32 %v1056_v14, %v423_v15 }
  0xad   : > { %494 = vmatpush.msra.mxu0 %v424_v16 }
 0x121   : > { %v284_v17 = vpop.f32.mrf.mxu3 }
 0x122   : > { %v287_v18 = vsel %vm260_vm1, %v284_v17, -inf }
 0x123   : > { %288 = vmax.xlane.f32.xlu0 %v287_v18  ;;  %v563_v18 = vpop.f32.mrf.mxu2 }
 0x196   : > { %v289_v30 = vpop.xlane.xlu0 %288 }
 0x197   : > { %v290_v31 = vsub.f32 %v284_v17, %v289_v30  ;;  %v1057_v17 = vld [vmem:[%s1491_s2 + $0x6] ss:$0 sm:$0xff]  ;;  %v1058_v30 = vld [vmem:[%s1491_s2 + $0x2] ss:$0 sm:$0xff] }
 0x198   : > { %v564_v19 = vadd.f32 %v1057_v17, %v563_v18 }
 0x199   : > { %v291_v32 = vmul.f32 1.442695, %v290_v31 }
 0x19a   : > { %981 = vmatpush.xpose.msk.msrb.mxu0 %vm260_vm1, %v564_v19  ;;  %v999_v19 = vld [vmem:[%s1490_s1 + $0x178] sm:$0xff] }
 0x19b   : > { %1063 = vpow2.f32 %v291_v32  ;;  %v532_v32 = vpop.f32.mrf.mxu1 }
 0x1a1   : > { %v1064_v33 = vpop.eup %1063 }
 0x1a2   : > { %v293_v34 = vsel %vm260_vm1, %v1064_v33, 0.0 }
 0x1a3   : > { %294 = vadd.xlane.f32.xlu0 %v293_v34  ;;  %v533_v34 = vadd.f32 %v1058_v30, %v532_v32 }
 0x1a5   : > { %v535_v35 = vmul.f32 0.35355338, %v533_v34 }
 0x216   : > { %v295_v41 = vpop.xlane.xlu0 %294 }
 0x217   : > { %1065 = vrcp.f32 %v295_v41  ;;  %v307_v45 = vand.u32 2147483648, %v295_v41  ;;  %v305_v47 = vand.u32 2147483647, %v295_v41  ;;  %vm301_vm3 = vweird.f32 %v295_v41 }
 0x219   : > { %v308_v49 = vor.u32 1.1754944e-38, %v307_v45  ;;  %vm306_vm5 = vcmp.eq.f32.partialorder %v305_v47, 8.507059e+37  ;;  %v992_v45 = vld [vmem:[%s1490_s1 + $0xf0] sm:$0xff] }
 0x21a   : > { %v986_v47 = vld [vmem:[%s1490_s1 + $0x70] sm:$0xff] }
 0x21d   : > { %v1066_v42 = vpop.eup %1065 }
 0x21e   : > { %v297_v43 = vmul.f32 %v1066_v42, %v295_v41  ;;  %vm302_vm2 = vweird.f32 %v1066_v42  ;;  %v976_v41 = vld [vmem:[%s1490_s1 + $0x148] sm:$0xff] }
 0x21f   : > { %vm303_vm4 = vmor %vm301_vm3, %vm302_vm2 }
 0x220   : > { %v298_v44 = vsub.f32 1.0, %v297_v43  ;;  %v987_v43 = vld [vmem:[%s1490_s1 + $0x78] sm:$0xff] }
 0x221   : > { %697 = vmatpush.msrb.mxu2 %v987_v43 }
 0x222   : > { %v299_v46 = vmul.f32 %v1066_v42, %v298_v44  ;;  %v993_v44 = vld [vmem:[%s1490_s1 + $0xf8] sm:$0xff] }
 0x223   : > { %698 = vmatpush.msrb.mxu2 %v986_v47 }
 0x224   : > { %v300_v48 = vadd.f32 %v1066_v42, %v299_v46  ;;  %v991_v46 = vld [vmem:[%s1490_s1 + $0xe8] sm:$0xff] }
 0x226   : > { %v304_v50 = vsel %vm303_vm4, %v1066_v42, %v300_v48  ;;  %v975_v42 = vld [vmem:[%s1490_s1 + $0x140] sm:$0xff]  ;;  %v985_v48 = vld [vmem:[%s1490_s1 + $0x68] sm:$0xff] }
 0x227   : > { %v309_v52 = vsel %vm306_vm5, %v308_v49, %v304_v50  ;;  %v990_v49 = vld [vmem:[%s1490_s1 + $0xe0] sm:$0xff]  ;;  %699 = vmatpush.msrb.mxu2 %v985_v48  ;;  %vm843_vm5 = vcmask 261312  }
 0x228   : > { %v310_v54 = vmul.f32 %v1064_v33, %v309_v52  ;;  %v984_v50 = vld [vmem:[%s1490_s1 + $0x60] sm:$0xff] }
 0x229   : > { %700 = vmatpush.msrb.mxu2 %v984_v50 }
 0x22a   : > { %941 = vmatmul.msk.f32.vlgmr.msrb.gmra.mxu3 %vm260_vm1, %v310_v54  ;;  %989 = vmatmul.msk.f32.vlgmr.msrb.gmra.mxu2 %vm175_vm0, %v1243_v8 }
 0x22b   : > { %588 = vmatpush.msrb.mxu3 %v978_v36 }
 0x22d   : > { %589 = vmatpush.msrb.mxu3 %v977_v40 }
 0x22f   : > { %590 = vmatpush.msrb.mxu3 %v976_v41 }
 0x231   : > { %591 = vmatpush.msrb.mxu3 %v975_v42 }
 0x232   : > { %961 = vmatmul.msk.f32.vlgmr.msra.gmra.mxu3 %vm260_vm1, %v365_v56  ;;  %v1059_v56 = vld [vmem:[%s1491_s2 + $0xa] ss:$0 sm:$0xff] }
 0x233   : > { %728 = vmatpush.msra.mxu3 %v993_v44 }
 0x235   : > { %729 = vmatpush.msra.mxu3 %v992_v45 }
 0x237   : > { %730 = vmatpush.msra.mxu3 %v991_v46 }
 0x239   : > { %731 = vmatpush.msra.mxu3 %v990_v49 }
 0x23a   : > { %980 = vmatmul.msk.f32.vlgmr.msrb.gmra.mxu3 %vm175_vm0, %v1243_v8 }
 0x242   : > { %995 = vmatmul.msk.f32.vlgmr.msra.gmra.mxu3 %vm175_vm0, %v1243_v8 }
 0x2ad   : > { %v331_v58 = vpop.f32.mrf.mxu3 }
 0x2ae   : > { %334 = vst.msk [vmem:[%s1319_s29] sm:$0xff] %vm260_vm1, %v331_v58 }
 0x2b5   : > { %v449_v59 = vpop.f32.mrf.mxu3 }
 0x2b6   : > { %v452_v60 = vsel %vm260_vm1, %v449_v59, -inf }
 0x2b7   : > { %453 = vmax.xlane.f32.xlu1 %v452_v60 }
 0x2bd   : > { %v593_v57 = vpop.f32.mrf.mxu3 }
 0x2be   : > { %v594_v58 = vadd.f32 %v1059_v56, %v593_v57 }
 0x2c0   : > { %664 = vmatpush.msrb.mxu1 %v594_v58 }
 0x2c5   : > { %v733_v60 = vpop.f32.mrf.mxu3 }
 0x32a   : > { %v454_v9 = vpop.xlane.xlu1 %453 }
 0x32b   : > { %v455_v10 = vsub.f32 %v449_v59, %v454_v9  ;;  %v1060_v59 = vld [vmem:[%s1491_s2 + $0x7] ss:$0 sm:$0xff] }
 0x32c   : > { %v734_v61 = vadd.f32 %v1060_v59, %v733_v60 }
 0x32d   : > { %v456_v11 = vmul.f32 1.442695, %v455_v10  ;;  %v1061_v10 = vld [vmem:[%s1491_s2 + $0x3] ss:$0 sm:$0xff] }
 0x32e   : > { %1002 = vmatpush.xpose.msk.msra.mxu1 %vm260_vm1, %v734_v61 }
 0x32f   : > { %1067 = vpow2.f32 %v456_v11 }
 0x335   : > { %v1068_v12 = vpop.eup %1067 }
 0x336   : > { %v458_v13 = vsel %vm260_vm1, %v1068_v12, 0.0 }
 0x337   : > { %459 = vadd.xlane.f32.xlu1 %v458_v13 }
 0x3aa   : > { %v460_v20 = vpop.xlane.xlu1 %459 }
 0x3ab   : > { %1069 = vrcp.f32 %v460_v20  ;;  %v472_v24 = vand.u32 2147483648, %v460_v20  ;;  %v470_v26 = vand.u32 2147483647, %v460_v20  ;;  %vm466_vm7 = vweird.f32 %v460_v20 }
 0x3ad   : > { %v473_v28 = vor.u32 1.1754944e-38, %v472_v24  ;;  %vm471_vm9 = vcmp.eq.f32.partialorder %v470_v26, 8.507059e+37 }
 0x3b1   : > { %v1070_v21 = vpop.eup %1069 }
 0x3b2   : > { %v462_v22 = vmul.f32 %v1070_v21, %v460_v20  ;;  %vm467_vm6 = vweird.f32 %v1070_v21  ;;  %v998_v20 = vld [vmem:[%s1490_s1 + $0x170] sm:$0xff] }
 0x3b3   : > { %vm468_vm8 = vmor %vm466_vm7, %vm467_vm6 }
 0x3b4   : > { %v463_v23 = vsub.f32 1.0, %v462_v22  ;;  %v996_v22 = vld [vmem:[%s1490_s1 + $0x160] sm:$0xff] }
 0x3b6   : > { %v464_v25 = vmul.f32 %v1070_v21, %v463_v23 }
 0x3b8   : > { %v465_v27 = vadd.f32 %v1070_v21, %v464_v25 }
 0x3ba   : > { %v469_v29 = vsel %vm468_vm8, %v1070_v21, %v465_v27  ;;  %v997_v21 = vld [vmem:[%s1490_s1 + $0x168] sm:$0xff] }
 0x3bb   : > { %v474_v31 = vsel %vm471_vm9, %v473_v28, %v469_v29  ;;  %v1062_v29 = vld [vmem:[%s1491_s2 + $0xb] ss:$0 sm:$0xff] }
 0x3bc   : > { %v475_v33 = vmul.f32 %v1068_v12, %v474_v31  ;;  %v702_v12 = vpop.f32.mrf.mxu2 }
 0x3bd   : > { %v703_v14 = vadd.f32 %v1061_v10, %v702_v12 }
 0x3be   : > { %962 = vmatmul.msk.f32.vlgmr.msra.gmra.mxu0 %vm260_vm1, %v475_v33 }
 0x3bf   : > { %v705_v15 = vmul.f32 0.35355338, %v703_v14  ;;  %758 = vmatpush.msra.mxu0 %v999_v19 }
 0x3c1   : > { %759 = vmatpush.msra.mxu0 %v998_v20 }
 0x3c3   : > { %760 = vmatpush.msra.mxu0 %v997_v21 }
 0x3c5   : > { %761 = vmatpush.msra.mxu0 %v996_v22 }
 0x3c6   : > { %982 = vmatmul.msk.f32.vlgmr.msrb.gmra.mxu0 %vm260_vm1, %v535_v35 }
 0x3ce   : > { %1001 = vmatmul.msk.f32.vlgmr.msra.gmra.mxu0 %vm175_vm0, %v1243_v8 }
 0x43b   : > { %v496_v37 = vpop.f32.mrf.mxu0 }
 0x443   : > { %v619_v38 = vpop.f32.mrf.mxu0 }
 0x444   : > { %v622_v39 = vsel %vm260_vm1, %v619_v38, -inf }
 0x445   : > { %623 = vmax.xlane.f32.xlu2 %v622_v39 }
 0x44b   : > { %v763_v30 = vpop.f32.mrf.mxu0 }
 0x44c   : > { %v764_v31 = vadd.f32 %v1062_v29, %v763_v30 }
 0x44e   : > { %834 = vmatpush.msra.mxu2 %v764_v31 }
 0x4b8   : > { %v624_v51 = vpop.xlane.xlu2 %623 }
 0x4b9   : > { %v625_v52 = vsub.f32 %v619_v38, %v624_v51 }
 0x4bb   : > { %v626_v53 = vmul.f32 1.442695, %v625_v52 }
 0x4bd   : > { %1071 = vpow2.f32 %v626_v53 }
 0x4c3   : > { %v1072_v54 = vpop.eup %1071 }
 0x4c4   : > { %v628_v55 = vsel %vm260_vm1, %v1072_v54, 0.0 }
 0x4c5   : > { %629 = vadd.xlane.f32.xlu2 %v628_v55 }
 0x4dd   : > { %500 = vrot.lane.b32.xlu2 %v496_v37, %s1143_s7 }
 0x538   : > { %v630_v62 = vpop.xlane.xlu2 %629 }
 0x539   : > { %1073 = vrcp.f32 %v630_v62  ;;  %v642_v3 = vand.u32 2147483648, %v630_v62  ;;  %v640_v5 = vand.u32 2147483647, %v630_v62  ;;  %vm636_vm12 = vweird.f32 %v630_v62 }
 0x53b   : > { %v643_v7 = vor.u32 1.1754944e-38, %v642_v3  ;;  %vm641_vm14 = vcmp.eq.f32.partialorder %v640_v5, 8.507059e+37 }
 0x53f   : > { %v1074_v63 = vpop.eup %1073 }
 0x540   : > { %v632_v0 = vmul.f32 %v1074_v63, %v630_v62  ;;  %v501_v1 = vpop.permute.xlu2 %500  ;;  %vm637_vm11 = vweird.f32 %v1074_v63 }
 0x541   : > { %504 = vst.msk [vmem:[%s1319_s29] sm:$0xff] %vm503_vm10, %v501_v1  ;;  %vm638_vm13 = vmor %vm636_vm12, %vm637_vm11 }
 0x542   : > { %v633_v2 = vsub.f32 1.0, %v632_v0 }
 0x544   : > { %v634_v4 = vmul.f32 %v1074_v63, %v633_v2 }
 0x546   : > { %v635_v6 = vadd.f32 %v1074_v63, %v634_v4 }
 0x548   : > { %v639_v9 = vsel %vm638_vm13, %v1074_v63, %v635_v6 }
 0x549   : > { %v644_v11 = vsel %vm641_vm14, %v643_v7, %v639_v9 }
 0x54a   : > { %v645_v13 = vmul.f32 %v1072_v54, %v644_v11 }
 0x54c   : > { %983 = vmatmul.msk.f32.vlgmr.msrb.gmra.mxu1 %vm260_vm1, %v645_v13 }
 0x554   : > { %1003 = vmatmul.msk.f32.vlgmr.msra.gmra.mxu1 %vm260_vm1, %v705_v15 }
 0x5c9   : > { %v666_v16 = vpop.f32.mrf.mxu1 }
 0x5d1   : > { %v789_v17 = vpop.f32.mrf.mxu1 }
 0x5d2   : > { %v792_v18 = vsel %vm260_vm1, %v789_v17, -inf }
 0x5d3   : > { %793 = vmax.xlane.f32.xlu0 %v792_v18 }
 0x5e7   : > { %670 = vrot.lane.b32.xlu0 %v666_v16, %s1144_s20  ;;  %s858_s20 = sshll.u32 %s1319_s29, 4  ;;  %s859_s20 = int_to_ptr.vmem [resolvable:$true] %s858_s20 }
 0x646   : > { %v794_v23 = vpop.xlane.xlu0 %793 }
 0x647   : > { %v795_v24 = vsub.f32 %v789_v17, %v794_v23 }
 0x649   : > { %v796_v25 = vmul.f32 1.442695, %v795_v24 }
 0x64b   : > { %1075 = vpow2.f32 %v796_v25 }
 0x651   : > { %v1076_v26 = vpop.eup %1075 }
 0x652   : > { %v798_v27 = vsel %vm260_vm1, %v1076_v26, 0.0 }
 0x653   : > { %799 = vadd.xlane.f32.xlu1 %v798_v27 }
 0x659   : > { %v671_v28 = vpop.permute.xlu0 %670 }
 0x65a   : > { %674 = vst.msk [vmem:[%s1319_s29] sm:$0xff] %vm673_vm15, %v671_v28 }
 0x6c6   : > { %v800_v32 = vpop.xlane.xlu1 %799 }
 0x6c7   : > { %1077 = vrcp.f32 %v800_v32  ;;  %v812_v35 = vand.u32 2147483648, %v800_v32  ;;  %v810_v37 = vand.u32 2147483647, %v800_v32  ;;  %vm806_vm2 = vweird.f32 %v800_v32 }
 0x6c9   : > { %v813_v39 = vor.u32 1.1754944e-38, %v812_v35  ;;  %vm811_vm4 = vcmp.eq.f32.partialorder %v810_v37, 8.507059e+37 }
 0x6cd   : > { %v1078_v8 = vpop.eup %1077 }
 0x6ce   : > { %v802_v33 = vmul.f32 %v1078_v8, %v800_v32  ;;  %vm807_vm0 = vweird.f32 %v1078_v8 }
 0x6cf   : > { %vm808_vm3 = vmor %vm806_vm2, %vm807_vm0 }
 0x6d0   : > { %v803_v34 = vsub.f32 1.0, %v802_v33 }
 0x6d2   : > { %v804_v36 = vmul.f32 %v1078_v8, %v803_v34 }
 0x6d4   : > { %v805_v38 = vadd.f32 %v1078_v8, %v804_v36 }
 0x6d6   : > { %v809_v40 = vsel %vm808_vm3, %v1078_v8, %v805_v38 }
 0x6d7   : > { %v814_v41 = vsel %vm811_vm4, %v813_v39, %v809_v40 }
 0x6d8   : > { %v815_v42 = vmul.f32 %v1076_v26, %v814_v41 }
 0x6da   : > { %1004 = vmatmul.msk.f32.vlgmr.msra.gmra.mxu2 %vm260_vm1, %v815_v42 }
 0x75d   : > { %v836_v43 = vpop.f32.mrf.mxu2 }
 0x75e   : > { %840 = vrot.lane.b32.xlu1 %v836_v43, %s1145_s9 }
 0x7d0   : > { %v841_v44 = vpop.permute.xlu1 %840 }
 0x7d1   : > { %844 = vst.msk [vmem:[%s1319_s29] sm:$0xff] %vm843_vm5, %v841_v44 }
 0x7d2   : > { %1106 = shalt.err (!%p1103_p3)
}
 0x7d3   : > { %1009 = dma.vmem_to_hbm [thread:$0]  (%p1204_p5), %s859_s20, 128, %s861_s24, %s846_s25  }
 0x7d4 PF: > { %p1015_p4 = scmp.ge.s32.totalorder %s1141_s15, 2  ;;  %s872_s27 = sand.u32 1, %s1129_s12  }
 0x7d5   : > { %s873_s29 = scalar_lea.sflag [#allocation3], %s872_s27 }
 0x7d6   : > { %p1012_p7 = pnand %p1015_p4, %p1208_p6 }
 0x7d8   : > { %p1013_p8 = pneg %p1012_p7 }
 0x7da   : > { %1124 = dma.done.wait (%p1013_p8), %s873_s29, 128  }
 0x7db   : > { %1126 = vsyncadd (%p1013_p8), %s873_s29, 4294967168  ;;  %p13_p9 = scmp.ge.s32.totalorder %s1191_s18, 4   ;;  %s1495_s12 = smov %s1133_s13 }
 0x7dc   : > { %s1496_s13 = smov %s1137_s14  ;;  %s1497_s14 = smov %s1202_s21 }
 0x7dd   : > { %s1498_s15 = smov %s1191_s18  ;;  %15 = sbr.rel (!%p13_p9) target bundleno = 3 (0x3), region = 89 }
 0x7e2   :  { %879 = vsyncpa [#allocation3], 1 }
 0x7e3   :  { %881 = vsyncpa [#allocation3 + $0x1], 1 }

</bundles_post_ra>
